<compile_context>
chip_gen: v5e
topology: v5e:2x2
jax: 0.10.0
libtpu: 0.0.40
codegen_flags: <defaults>
</compile_context>

<pallas_src>
import jax
import jax.numpy as jnp
from jax.experimental import pallas as pl
from jax.experimental.pallas import tpu as pltpu


# ----------------------------------------------------------------------------
# Pallas kernel: fused SE block for a tile of TB batch elements
# ----------------------------------------------------------------------------
def _se_block_kernel(x_ref, w1_ref, w2_ref, o_ref):
    # x_ref : (TB, C, HWp)  activation slab for this batch tile
    # w1_ref: (C, Cr)       first FC weight, pre-scaled by 1/HW (pooled-sum @ w1)
    # w2_ref: (Cr, C)       second FC weight
    # o_ref : (TB, C, HWp)

    # --- squeeze: global pool as an f32 sum over the spatial (lane) axis ---------
    # (1/HW is folded into w1; zero-padded lanes contribute nothing to the sum.)
    pooled = jnp.sum(x_ref[...].astype(jnp.float32), axis=2)          # (TB, C)

    # --- excitation: FC -> ReLU -> FC -> Sigmoid (f32 MXU accumulation) ----------
    h = jnp.dot(pooled, w1_ref[...],
                preferred_element_type=jnp.float32)                   # (TB, Cr)
    h = jnp.maximum(h, 0.0)
    z = jnp.dot(h, w2_ref[...],
                preferred_element_type=jnp.float32)                   # (TB, C)
    y = jax.nn.sigmoid(z)                                             # exp on EUP

    # --- scale: channel-wise rescale (fresh VMEM read; no reused slab bind) ------
    o_ref[...] = (x_ref[...].astype(jnp.float32) * y[:, :, None]).astype(o_ref.dtype)


# ----------------------------------------------------------------------------
# Wrapper
# ----------------------------------------------------------------------------
def se_block(x_nchw, w1, w2):
    """SEBlock forward.

    x_nchw: (B, C, H, W) float32 or bfloat16
    w1    : (C, C//r)    first Linear weight, pre-transposed (pooled @ w1)
    w2    : (C//r, C)    second Linear weight, pre-transposed (h @ w2)
    """
    B, C, H, W = x_nchw.shape
    HW = H * W
    Cr = w1.shape[1]
    assert w1.shape == (C, Cr) and w2.shape == (Cr, C)
    assert C % 8 == 0, "channel count must be a multiple of 8 for (8,128) tiling"

    dtype = x_nchw.dtype
    itemsize = jnp.dtype(dtype).itemsize

    # --- lane-dense spatial axis: pad H*W up to a multiple of 128 ----------------
    HWp = ((HW + 127) // 128) * 128
    x3 = x_nchw.reshape(B, C, HW)                       # NCHW contiguous -> free reshape
    if HWp != HW:
        x3 = jnp.pad(x3, ((0, 0), (0, 0), (0, HWp - HW)))

    # --- batch tile size: big DMA blocks, bounded by the smallest scoped VMEM ----
    slab_bytes = C * HWp * itemsize                     # one batch element in VMEM
    vmem_budget = 8 * 1024 * 1024                       # conservative vs v5e's 16 MiB scoped
    tb_cap = max(1, vmem_budget // (4 * slab_bytes))    # in+out, double-buffered
    TB = int(min(32, tb_cap, max(1, -(-B // 2))))       # keep >=2 grid steps when B >= 2
    Bp = -(-B // TB) * TB                               # pad batch to a multiple of TB
    if Bp != B:
        x3 = jnp.pad(x3, ((0, Bp - B), (0, 0), (0, 0)))
    num_blocks = Bp // TB

    # --- fold the 1/HW of the average pool into the first FC weight --------------
    w1_scaled = (w1.astype(jnp.float32) / float(HW))
    w2_f32 = w2.astype(jnp.float32)

    cost = pl.CostEstimate(
        flops=B * (2 * C * Cr * 2 + 2 * C * HW),
        transcendentals=B * C,
        bytes_accessed=2 * B * C * HW * itemsize + (C * Cr + Cr * C) * 4,
    )

    out = pl.pallas_call(
        _se_block_kernel,
        out_shape=jax.ShapeDtypeStruct((Bp, C, HWp), dtype),
        grid=(num_blocks,),                                          # one batch tile / step
        in_specs=[
            pl.BlockSpec((TB, C, HWp), lambda b: (b, 0, 0)),         # activation tile
            pl.BlockSpec((C, Cr), lambda b: (0, 0)),                 # FC1 weight (resident)
            pl.BlockSpec((Cr, C), lambda b: (0, 0)),                 # FC2 weight (resident)
        ],
        out_specs=pl.BlockSpec((TB, C, HWp), lambda b: (b, 0, 0)),
        compiler_params=pltpu.CompilerParams(
            dimension_semantics=("parallel",)),                      # both TCs stream tiles
        cost_estimate=cost,
    )(x3, w1_scaled, w2_f32)

    return out[:B, :, :HW].reshape(B, C, H, W)


# ----------------------------------------------------------------------------
# Pure-JAX reference (correctness check)
# ----------------------------------------------------------------------------
def se_block_ref(x, w1, w2):
    pooled = jnp.mean(x.astype(jnp.float32), axis=(2, 3))            # (B, C)
    h = jnp.maximum(pooled @ w1.astype(jnp.float32), 0.0)            # (B, Cr)
    y = jax.nn.sigmoid(h @ w2.astype(jnp.float32))                   # (B, C)
    return (x.astype(jnp.float32) * y[:, :, None, None]).astype(x.dtype)


# ----------------------------------------------------------------------------
if __name__ == "__main__":
    key = jax.random.PRNGKey(0)
    kx, k1, k2 = jax.random.split(key, 3)

    # Shapes consistent with SEBlock(channel=64, reduction=16): hidden = 64 // 16 = 4.
    B, C, H, W = 4, 64, 16, 16
    reduction = 16
    Cr = C // reduction

    x = jax.random.normal(kx, (B, C, H, W), jnp.float32)

    # nn.Linear(bias=False) default init ~ U(-1/sqrt(fan_in), 1/sqrt(fan_in)).
    # Weights stored pre-transposed so the kernel computes pooled @ w1 and h @ w2.
    w1 = jax.random.uniform(k1, (C, Cr), jnp.float32, -1.0, 1.0) / (C ** 0.5)
    w2 = jax.random.uniform(k2, (Cr, C), jnp.float32, -1.0, 1.0) / (Cr ** 0.5)

    out = se_block(x, w1, w2)
    out = jax.block_until_ready(out)

    ref = se_block_ref(x, w1, w2)

    assert out.shape == (B, C, H, W)
    assert bool(jnp.all(jnp.isfinite(out)))
    assert bool(jnp.allclose(out, ref, atol=1e-3, rtol=1e-3))
    print("KERNEL_OK")
</pallas_src>

<mosaic_0001>
module attributes {stable_mosaic.version = 11 : i64} {
  func.func @_se_block_kernel(%arg0: i32, %arg1: memref<2x64x256xf32, #tpu.memory_space<vmem>>, %arg2: memref<64x4xf32, #tpu.memory_space<vmem>>, %arg3: memref<4x64xf32, #tpu.memory_space<vmem>>, %arg4: memref<2x64x256xf32, #tpu.memory_space<vmem>>) attributes {dimension_semantics = [#tpu.dimension_semantics<parallel>], iteration_bounds = array<i64: 2>, scalar_prefetch = 0 : i64, scratch_operands = 0 : i64, tpu.core_type = #tpu.core_type<tc>, window_params = [{transform_indices = @transform_0, window_bounds = array<i64: 2, 64, 256>}, {pipeline_mode = #tpu.pipeline_mode<synchronous>, transform_indices = @transform_1, window_bounds = array<i64: 64, 4>}, {pipeline_mode = #tpu.pipeline_mode<synchronous>, transform_indices = @transform_2, window_bounds = array<i64: 4, 64>}, {transform_indices = @transform_3, window_bounds = array<i64: 2, 64, 256>}]} {
    %c0 = arith.constant 0 : index
    %c0_0 = arith.constant 0 : index
    %c0_1 = arith.constant 0 : index
    %0 = vector.load %arg1[%c0, %c0_0, %c0_1] : memref<2x64x256xf32, #tpu.memory_space<vmem>>, vector<2x64x256xf32>
    %cst = arith.constant dense<0.000000e+00> : vector<2x64xf32>
    %1 = vector.multi_reduction <add>, %0, %cst [2] : vector<2x64x256xf32> to vector<2x64xf32>
    %c0_2 = arith.constant 0 : index
    %c0_3 = arith.constant 0 : index
    %2 = vector.load %arg2[%c0_2, %c0_3] : memref<64x4xf32, #tpu.memory_space<vmem>>, vector<64x4xf32>
    %cst_4 = arith.constant dense<0.000000e+00> : vector<2x4xf32>
    %3 = tpu.matmul %1, %2, %cst_4 {dimension_numbers = #tpu.dot_dimension_numbers<[1], [0], [0], [1], [0, 0, 1, 1], [], []>} : vector<2x64xf32>, vector<64x4xf32>, vector<2x4xf32> -> vector<2x4xf32>
    %cst_5 = arith.constant 0.000000e+00 : f32
    %4 = vector.broadcast %cst_5 : f32 to vector<2x4xf32>
    %5 = arith.maximumf %3, %4 : vector<2x4xf32>
    %c0_6 = arith.constant 0 : index
    %c0_7 = arith.constant 0 : index
    %6 = vector.load %arg3[%c0_6, %c0_7] : memref<4x64xf32, #tpu.memory_space<vmem>>, vector<4x64xf32>
    %cst_8 = arith.constant dense<0.000000e+00> : vector<2x64xf32>
    %7 = tpu.matmul %5, %6, %cst_8 {dimension_numbers = #tpu.dot_dimension_numbers<[1], [0], [0], [1], [0, 0, 1, 1], [], []>} : vector<2x4xf32>, vector<4x64xf32>, vector<2x64xf32> -> vector<2x64xf32>
    %8 = arith.negf %7 : vector<2x64xf32>
    %9 = math.exp %8 : vector<2x64xf32>
    %cst_9 = arith.constant 1.000000e+00 : f32
    %10 = vector.broadcast %cst_9 : f32 to vector<2x64xf32>
    %11 = arith.addf %10, %9 : vector<2x64xf32>
    %12 = arith.divf %10, %11 : vector<2x64xf32>
    %c0_10 = arith.constant 0 : index
    %c0_11 = arith.constant 0 : index
    %c0_12 = arith.constant 0 : index
    %13 = vector.load %arg1[%c0_10, %c0_11, %c0_12] : memref<2x64x256xf32, #tpu.memory_space<vmem>>, vector<2x64x256xf32>
    %14 = vector.shape_cast %12 : vector<2x64xf32> to vector<2x64x1xf32>
    %15 = vector.broadcast %14 : vector<2x64x1xf32> to vector<2x64x256xf32>
    %16 = arith.mulf %13, %15 : vector<2x64x256xf32>
    %c0_13 = arith.constant 0 : index
    %c0_14 = arith.constant 0 : index
    %c0_15 = arith.constant 0 : index
    %17 = vector.load %arg4[%c0_13, %c0_14, %c0_15] : memref<2x64x256xf32, #tpu.memory_space<vmem>>, vector<2x64x256xf32>
    tpu.vector_store %arg4[%c0_13, %c0_14, %c0_15], %16 {strides = array<i32>} : memref<2x64x256xf32, #tpu.memory_space<vmem>>, vector<2x64x256xf32>,
    return
  }
  func.func @transform_0(%arg0: i32) -> (i32, i32, i32) {
    %c0_i32 = arith.constant 0 : i32
    %c0_i32_0 = arith.constant 0 : i32
    %c0_i32_1 = arith.constant 0 : i32
    return %arg0, %c0_i32, %c0_i32_0 : i32, i32, i32
  }
  func.func @transform_1(%arg0: i32) -> (i32, i32) {
    %c0_i32 = arith.constant 0 : i32
    %c0_i32_0 = arith.constant 0 : i32
    %c0_i32_1 = arith.constant 0 : i32
    return %c0_i32, %c0_i32_0 : i32, i32
  }
  func.func @transform_2(%arg0: i32) -> (i32, i32) {
    %c0_i32 = arith.constant 0 : i32
    %c0_i32_0 = arith.constant 0 : i32
    %c0_i32_1 = arith.constant 0 : i32
    return %c0_i32, %c0_i32_0 : i32, i32
  }
  func.func @transform_3(%arg0: i32) -> (i32, i32, i32) {
    %c0_i32 = arith.constant 0 : i32
    %c0_i32_0 = arith.constant 0 : i32
    %c0_i32_1 = arith.constant 0 : i32
    return %arg0, %c0_i32, %c0_i32_0 : i32, i32, i32
  }
}

</mosaic_0001>

<bundles_post_ra>
// kernel: tpu_custom_call.1
= control target key start
LH: loop header
LB: loop body
LE: loop exit
PB: predicated region body
PF: predicated region fallthrough
CT: control target
= control target key end

     0   :  { %8 = vsyncpa [#allocation3], 0  ;;  %s1248_s0 = inlined_call_operand.hbm [shape: f32[4,64,256], index: 0, kind: input, shape index: {}]   ;;  %s1249_s1 = inlined_call_operand.vmem [shape: f32[64,4], index: 1, kind: input, shape index: {}]   ;;  %s1250_s2 = inlined_call_operand.vmem [shape: f32[4,64], index: 2, kind: input, shape index: {}]   ;;  %s1251_s3 = inlined_call_operand.hbm [shape: f32[4,64,256], index: 3, kind: output, shape index: {}]  }
   0x1   :  { %10 = vsyncpa [#allocation3 + $0x1], 0 }
   0x2   :  { %11 = vsyncpa [#allocation4], 0 }
   0x3   :  { %13 = vsyncpa [#allocation4 + $0x1], 0  ;;  %s887_s12 = smov 0   ;;  %s889_s13 = smov 0  }
   0x4   :  { %s891_s14 = smov 0   ;;  %s893_s15 = smov 0  }
   0x5 LB: > { %s908_s16 = sadd.s32 4294967295, %s861_s15   ;;  %s670_s17 = sadd.s32 4294967294, %s861_s15   ;;  %s861_s15 = sphi %s893_s15, %s1263_s15   ;;  %s857_s14 = sphi %s891_s14, %s1262_s14   ;;  %s853_s13 = sphi %s889_s13, %s1261_s13   ;;  %s849_s12 = sphi %s887_s12, %s1260_s12  }
   0x6   : > { %s912_s18 = sadd.s32 1, %s861_s15   ;;  %s26_s19 = sadd.s32 1, %s857_s14 }
   0x7   : > { %s23_s20 = ssub.s32 %s861_s15, %s912_s18  ;;  %p33_p0 = scmp.ne.s32.totalorder %s857_s14, %s853_s13 }
   0x8   : > { %p24_p1 = scmp.eq.s32.totalorder %s23_s20, 0  ;;  %p34_p2 = scmp.eq.s32.totalorder %s861_s15, 0 }
   0x9   : > { %p39_p3 = scmp.ne.s32.totalorder %s853_s13, %s849_s12  ;;  %p40_p4 = scmp.eq.s32.totalorder %s908_s16, 0 }
   0xa   : > { %s924_s21 = scalar_select %p24_p1, %s857_s14, %s26_s19  }
   0xb   : > { %p926_p5 = por %p34_p2, %p33_p0  ;;  %p930_p6 = por %p40_p4, %p39_p3 }
   0xc   : > { %p105_p7 = scmp.eq.s32.totalorder %s908_s16, 1  ;;  %p111_p8 = scmp.eq.s32.totalorder %s670_s17, 1 }
   0xd   : > { %p706_p10 = scmp.lt.s32.totalorder %s861_s15, 2  ;;  %s137_s26 = sand.u32 1, %s857_s14  }
   0xe   : > { %p937_p11 = por %p105_p7, %p33_p0  ;;  %p941_p12 = por %p111_p8, %p39_p3 }
   0xf   : > { %s691_s27 = sshll.u32 %s861_s15, 8  ;;  %s673_s28 = sshll.u32 %s137_s26, 8 }
  0x10   : > { %s147_s4 = scalar_lea.hbm %s1248_s0, %s691_s27  ;;  %s141_s6 = scalar_lea.vmem [#allocation2], %s673_s28 }
  0x11   : > { %s148_s5 = sshll.u32 %s147_s4, 4  ;;  %s150_s7 = sshll.u32 %s141_s6, 4  ;;  %s149_s5 = int_to_ptr.hbm [resolvable:$true] %s148_s5  ;;  %s151_s7 = int_to_ptr.vmem [resolvable:$true] %s150_s7 }
  0x12   : > { %p952_p13 = pnand %p706_p10, %p926_p5  ;;  %p677_p0 = scmp.ge.s32.totalorder %s861_s15, 1 }
  0x13   : > { %p158_p1 = scmp.lt.s32.totalorder %s861_s15, 3  ;;  %s138_s9 = scalar_lea.sflag [#allocation3], %s137_s26 }
  0x14   : > { %s765_s10 = sshra.s32 %s149_s5, 4  ;;  %p769_p3 = pneg %p952_p13  ;;  %s766_s10 = int_to_ptr.hbm [resolvable:$true] %s765_s10 }
  0x15   : > { %s767_s11 = scalar_lea.hbm %s766_s10, 256  ;;  %s772_s20 = scalar_lea.hbm %s1248_s0, 512 }
  0x16   : > { %p768_p2 = scmp.ne.s32.totalorder %s766_s10, %s767_s11  ;;  %p773_p5 = scmp.lt.s32.totalorder %s766_s10, %s1248_s0 }
  0x17   : > { %p774_p8 = scmp.lt.s32.totalorder %s772_s20, %s767_s11 }
  0x18   : > { %p770_p4 = pnand %p769_p3, %p768_p2 }
  0x19   : > { %p775_p10 = por %p774_p8, %p773_p5 }
  0x1a   : > { %p771_p7 = pneg %p770_p4 }
  0x1c   : > { %p776_p9 = pnand %p775_p10, %p771_p7 }
  0x1e   : > { %779 = shalt.err (!%p776_p9)
}
  0x1f   : > { %s863_s26 = smov 256   ;;  %s864_s28 = smov 16  }
  0x20   : > { %701 = dma.hbm_to_vmem [thread:$0]  (!%p952_p13), %s149_s5, 4096, %s151_s7, %s138_s9, %s863_s26, %s863_s26, %s864_s28  }
  0x21   : > { %p159_p2 = pnand %p677_p0, %p158_p1 }
  0x22   : > { %s973_s29 = sand.u32 (!%p159_p2), 1, %s853_s13  }
  0x23   : > { %162 = sbr.rel (%p159_p2) target bundleno = 692 (0x2b4), region = 32  ;;  %s678_s30 = sshll.u32 (!%p159_p2), %s973_s29, 8 }
  0x24   : > { %s165_s4 = scalar_lea.sflag (!%p159_p2), [#allocation3], %s973_s29  ;;  %s979_s6 = scalar_lea.vmem (!%p159_p2), [#allocation2], %s678_s30 }
  0x28   : > { %840 = dma.done.wait (%p930_p6), %s165_s4, 4096  }
  0x29   : > { %842 = vsyncadd (%p930_p6), %s165_s4, 4294963200  ;;  %v986_v0 = vld [vmem:[%s979_s6 + $0x80] sm:$0xff]  ;;  %v989_v1 = vld [vmem:[%s979_s6 + $0x88] sm:$0xff]  ;;  %vm303_vm0 = vcmask 130112   ;;  %vm307_vm1 = vcmask 195712   ;;  %vm311_vm2 = vcmask 261312  }
  0x2a   : > { %v992_v2 = vld [vmem:[%s979_s6] sm:$0xff]  ;;  %v250_v3 = vadd.f32 %v989_v1, %v986_v0  ;;  %v997_v4 = vld [vmem:[%s979_s6 + $0x8] sm:$0xff]  ;;  %v1010_v9 = vld [vmem:[%s979_s6 + $0x90] sm:$0xff]  ;;  %vm315_vm3 = vcmask 326912   ;;  %vm319_vm4 = vcmask 392512   ;;  %vm323_vm5 = vcmask 458112  }
  0x2b   : > { %v1000_v5 = vld [vmem:[%s979_s6 + $0x20] sm:$0xff]  ;;  %v1003_v6 = vld [vmem:[%s979_s6 + $0x28] sm:$0xff]  ;;  %v226_v7 = vadd.f32 %v997_v4, %v992_v2  ;;  %v1013_v10 = vld [vmem:[%s979_s6 + $0x98] sm:$0xff]  ;;  %vm327_vm6 = vcmask 523712   ;;  %vm344_vm7 = vcmask 1041409   ;;  %vm346_vm8 = vcmask 523264  }
  0x2c   : > { %v232_v8 = vadd.f32 %v1003_v6, %v1000_v5  ;;  %251 = vadd.xlane.f32.xlu1 %v250_v3  ;;  %v1016_v11 = vld [vmem:[%s979_s6 + $0x10] sm:$0xff]  ;;  %v1019_v12 = vld [vmem:[%s979_s6 + $0x18] sm:$0xff]  ;;  %v1022_v13 = vld [vmem:[%s979_s6 + $0xa0] sm:$0xff]  ;;  %v253_v15 = vadd.f32 %v1013_v10, %v1010_v9  ;;  %vm375_vm9 = vcmask 1043456   ;;  %vm371_vm10 = vcmask 31744   ;;  %s1150_s7 = scalar_lea.vmem [#allocation5], %s678_s30 }
  0x2d   : > { %227 = vadd.xlane.f32.xlu0 %v226_v7  ;;  %v1025_v14 = vld [vmem:[%s979_s6 + $0xa8] sm:$0xff]  ;;  %v229_v16 = vadd.f32 %v1019_v12, %v1016_v11  ;;  %v1034_v18 = vld [vmem:[%s979_s6 + $0xb0] sm:$0xff]  ;;  %v1037_v19 = vld [vmem:[%s979_s6 + $0xb8] sm:$0xff]  ;;  %v1252_v7 = vlaneseq  ;;  %s693_s30 = sshll.u32 %s908_s16, 8  ;;  %s594_s11 = sshll.u32 %s1150_s7, 4  ;;  %s595_s11 = int_to_ptr.vmem [resolvable:$true] %s594_s11 }
  0x2e   : > { %233 = vadd.xlane.f32.xlu2 %v232_v8  ;;  %v256_v17 = vadd.f32 %v1025_v14, %v1022_v13  ;;  %v1040_v20 = vld [vmem:[%s979_s6 + $0x30] sm:$0xff]  ;;  %v1043_v21 = vld [vmem:[%s979_s6 + $0x38] sm:$0xff]  ;;  %v1046_v22 = vld [vmem:[%s979_s6 + $0x40] sm:$0xff]  ;;  %v259_v24 = vadd.f32 %v1037_v19, %v1034_v18  ;;  %s593_s10 = scalar_lea.hbm %s1251_s3, %s693_s30  ;;  %s581_s19 = scalar_lea.sflag [#allocation4], %s973_s29 }
  0x2f   : > { %v1049_v23 = vld [vmem:[%s979_s6 + $0x48] sm:$0xff]  ;;  %v235_v25 = vadd.f32 %v1043_v21, %v1040_v20  ;;  %v1058_v27 = vld [vmem:[%s979_s6 + $0x50] sm:$0xff]  ;;  %v1061_v28 = vld [vmem:[%s979_s6 + $0x58] sm:$0xff]  ;;  %v299_v8 = vand.u32 127, %v1252_v7  ;;  %s596_s17 = sshll.u32 %s593_s10, 4  ;;  %s815_s26 = scalar_lea.hbm %s1251_s3, 512  ;;  %s597_s17 = int_to_ptr.hbm [resolvable:$true] %s596_s17 }
  0x30   : > { %v238_v26 = vadd.f32 %v1049_v23, %v1046_v22  ;;  %v1064_v29 = vld [vmem:[%s979_s6 + $0xc0] sm:$0xff]  ;;  %v1067_v30 = vld [vmem:[%s979_s6 + $0xc8] sm:$0xff]  ;;  %v1070_v31 = vld [vmem:[%s979_s6 + $0xd0] sm:$0xff]  ;;  %v241_v33 = vadd.f32 %v1061_v28, %v1058_v27  ;;  %s809_s16 = sshra.s32 %s597_s17, 4  ;;  %s810_s16 = int_to_ptr.hbm [resolvable:$true] %s809_s16 }
  0x31   : > { %v1073_v32 = vld [vmem:[%s979_s6 + $0xd8] sm:$0xff]  ;;  %v262_v34 = vadd.f32 %v1067_v30, %v1064_v29  ;;  %v1082_v36 = vld [vmem:[%s979_s6 + $0xe0] sm:$0xff]  ;;  %v1085_v37 = vld [vmem:[%s979_s6 + $0xe8] sm:$0xff]  ;;  %s811_s20 = scalar_lea.hbm %s810_s16, 256  ;;  %p816_p0 = scmp.lt.s32.totalorder %s810_s16, %s1251_s3 }
  0x32   : > { %v265_v35 = vadd.f32 %v1073_v32, %v1070_v31  ;;  %v1088_v38 = vld [vmem:[%s979_s6 + $0x60] sm:$0xff]  ;;  %v1091_v39 = vld [vmem:[%s979_s6 + $0x68] sm:$0xff]  ;;  %v1094_v40 = vld [vmem:[%s979_s6 + $0x70] sm:$0xff]  ;;  %v268_v42 = vadd.f32 %v1085_v37, %v1082_v36  ;;  %p812_p6 = scmp.ne.s32.totalorder %s810_s16, %s811_s20  ;;  %p817_p1 = scmp.lt.s32.totalorder %s815_s26, %s811_s20 }
  0x33   : > { %v1097_v41 = vld [vmem:[%s979_s6 + $0x78] sm:$0xff]  ;;  %v244_v43 = vadd.f32 %v1091_v39, %v1088_v38  ;;  %v1106_v45 = vld [vmem:[%s979_s6 + $0xf0] sm:$0xff]  ;;  %v279_v53 = vld [vmem:[%s1249_s1 + $0x28] sm:$0xff] }
  0x34   : > { %254 = vadd.xlane.f32.xlu1 %v253_v15  ;;  %v247_v44 = vadd.f32 %v1097_v41, %v1094_v40  ;;  %v1109_v46 = vld [vmem:[%s979_s6 + $0xf8] sm:$0xff]  ;;  %v280_v49 = vld [vmem:[%s1249_s1 + $0x30] sm:$0xff]  ;;  %v278_v54 = vld [vmem:[%s1249_s1 + $0x20] sm:$0xff]  ;;  %v301_v15 = vadd.s32 4294967288, %v299_v8  ;;  %p813_p9 = pnand %p812_p6, %p937_p11  ;;  %p818_p3 = por %p817_p1, %p816_p0 }
  0x35   : > { %230 = vadd.xlane.f32.xlu0 %v229_v16  ;;  %v271_v47 = vadd.f32 %v1109_v46, %v1106_v45  ;;  %v281_v48 = vld [vmem:[%s1249_s1 + $0x38] sm:$0xff]  ;;  %v276_v56 = vld [vmem:[%s1249_s1 + $0x10] sm:$0xff]  ;;  %v275_v60 = vld [vmem:[%s1249_s1 + $0x8] sm:$0xff] }
  0x36   : > { %257 = vadd.xlane.f32.xlu2 %v256_v17  ;;  %357 = vmatpush.msra.mxu0 %v281_v48  ;;  %v277_v55 = vld [vmem:[%s1249_s1 + $0x18] sm:$0xff]  ;;  %v274_v61 = vld [vmem:[%s1249_s1] sm:$0xff]  ;;  %p814_p13 = pneg %p813_p9 }
  0x38   : > { %358 = vmatpush.msra.mxu0 %v280_v49  ;;  %v317_v49 = vadd.s32 4294967256, %v299_v8  ;;  %p819_p4 = pnand %p818_p3, %p814_p13 }
  0x3a   : > { %359 = vmatpush.msra.mxu0 %v279_v53 }
  0x3c   : > { %260 = vadd.xlane.f32.xlu1 %v259_v24  ;;  %360 = vmatpush.msra.mxu0 %v278_v54  ;;  %v305_v24 = vadd.s32 4294967280, %v299_v8  ;;  %v321_v54 = vadd.s32 4294967248, %v299_v8 }
  0x3d   : > { %236 = vadd.xlane.f32.xlu0 %v235_v25 }
  0x3e   : > { %239 = vadd.xlane.f32.xlu2 %v238_v26  ;;  %361 = vmatpush.msra.mxu0 %v277_v55 }
  0x40   : > { %362 = vmatpush.msra.mxu0 %v276_v56 }
  0x42   : > { %363 = vmatpush.msra.mxu0 %v275_v60 }
  0x44   : > { %242 = vadd.xlane.f32.xlu1 %v241_v33  ;;  %364 = vmatpush.msra.mxu0 %v274_v61  ;;  %v309_v33 = vadd.s32 4294967272, %v299_v8 }
  0x45   : > { %263 = vadd.xlane.f32.xlu0 %v262_v34 }
  0x46   : > { %266 = vadd.xlane.f32.xlu2 %v265_v35 }
  0x4c   : > { %269 = vadd.xlane.f32.xlu1 %v268_v42 }
  0x4d   : > { %245 = vadd.xlane.f32.xlu0 %v244_v43 }
  0x4e   : > { %248 = vadd.xlane.f32.xlu2 %v247_v44  ;;  %v313_v44 = vadd.s32 4294967264, %v299_v8 }
  0x55   : > { %272 = vadd.xlane.f32.xlu0 %v271_v47 }
  0x9f   : > { %v252_v50 = vpop.xlane.xlu1 %251 }
  0xa0   : > { %v228_v51 = vpop.xlane.xlu0 %227  ;;  %v329_v34 = vperm.slane %v252_v50, %v299_v8 }
  0xa1   : > { %v234_v52 = vpop.xlane.xlu2 %233  ;;  %v300_v35 = vperm.slane %v228_v51, %v299_v8 }
  0xa2   : > { %v306_v43 = vperm.slane %v234_v52, %v305_v24 }
  0xa7   : > { %v255_v57 = vpop.xlane.xlu1 %254 }
  0xa8   : > { %v231_v58 = vpop.xlane.xlu0 %230  ;;  %v330_v42 = vperm.slane %v255_v57, %v301_v15  ;;  %v325_v57 = vadd.s32 4294967240, %v299_v8 }
  0xa9   : > { %v258_v59 = vpop.xlane.xlu2 %257  ;;  %v302_v26 = vperm.slane %v231_v58, %v301_v15 }
  0xaa   : > { %v332_v53 = vperm.slane %v258_v59, %v305_v24  ;;  %v331_v56 = vsel %vm303_vm0, %v330_v42, %v329_v34 }
  0xab   : > { %v304_v47 = vsel %vm303_vm0, %v302_v26, %v300_v35 }
  0xac   : > { %v308_v61 = vsel %vm307_vm1, %v306_v43, %v304_v47  ;;  %v333_v15 = vsel %vm307_vm1, %v332_v53, %v331_v56  ;;  %v1258_v53 = vlaneseq }
  0xaf   : > { %v261_v62 = vpop.xlane.xlu1 %260 }
  0xb0   : > { %v237_v63 = vpop.xlane.xlu0 %236  ;;  %v334_v60 = vperm.slane %v261_v62, %v309_v33 }
  0xb1   : > { %v240_v3 = vpop.xlane.xlu2 %239  ;;  %v310_v48 = vperm.slane %v237_v63, %v309_v33 }
  0xb2   : > { %v314_v58 = vperm.slane %v240_v3, %v313_v44  ;;  %v335_v24 = vsel %vm311_vm2, %v334_v60, %v333_v15 }
  0xb3   : > { %v312_v50 = vsel %vm311_vm2, %v310_v48, %v308_v61 }
  0xb4   : > { %v316_v62 = vsel %vm315_vm3, %v314_v58, %v312_v50 }
  0xb7   : > { %v243_v17 = vpop.xlane.xlu1 %242 }
  0xb8   : > { %v264_v16 = vpop.xlane.xlu0 %263  ;;  %v318_v51 = vperm.slane %v243_v17, %v317_v49 }
  0xb9   : > { %v267_v25 = vpop.xlane.xlu2 %266  ;;  %v336_v7 = vperm.slane %v264_v16, %v313_v44 }
  0xba   : > { %v338_v26 = vperm.slane %v267_v25, %v317_v49  ;;  %v320_v3 = vsel %vm319_vm4, %v318_v51, %v316_v62  ;;  %v370_v25 = vld [vmem:[%s1250_s2] sm:$0xf] }
  0xbb   : > { %v337_v33 = vsel %vm315_vm3, %v336_v7, %v335_v24  ;;  %681 = vmatpush.msk.msra.mxu1 %vm375_vm9, %v370_v25 }
  0xbc   : > { %v339_v17 = vsel %vm319_vm4, %v338_v26, %v337_v33 }
  0xbf   : > { %v270_v52 = vpop.xlane.xlu1 %269 }
  0xc0   : > { %v246_v55 = vpop.xlane.xlu0 %245  ;;  %v340_v34 = vperm.slane %v270_v52, %v321_v54 }
  0xc1   : > { %v322_v63 = vperm.slane %v246_v55, %v321_v54  ;;  %v249_v59 = vpop.xlane.xlu2 %248  ;;  %v420_v54 = vshrl.u32 %v1258_v53, 7 }
  0xc2   : > { %v326_v16 = vperm.slane %v249_v59, %v325_v57  ;;  %v341_v8 = vsel %vm323_vm5, %v340_v34, %v339_v17 }
  0xc3   : > { %v324_v35 = vsel %vm323_vm5, %v322_v63, %v320_v3  ;;  %744 = vset.pattern.permute.xlu1 %v420_v54  ;;  %v433_v55 = vadd.s32 16, %v420_v54  ;;  %v427_v56 = vadd.s32 8, %v420_v54  ;;  %v439_v3 = vadd.s32 24, %v420_v54 }
  0xc4   : > { %v328_v44 = vsel %vm327_vm6, %v326_v16, %v324_v35  ;;  %v445_v16 = vadd.s32 32, %v420_v54  ;;  %v451_v17 = vadd.s32 40, %v420_v54 }
  0xc5   : > { %746 = vset.pattern.permute.xlu0 %v433_v55  ;;  %745 = vset.pattern.permute.xlu2 %v427_v56 }
  0xc8   : > { %v273_v42 = vpop.xlane.xlu0 %272 }
  0xc9   : > { %v342_v43 = vperm.slane %v273_v42, %v325_v57  ;;  %v457_v42 = vadd.s32 48, %v420_v54 }
  0xcb   : > { %v343_v47 = vsel %vm327_vm6, %v342_v43, %v341_v8  ;;  %v463_v43 = vadd.s32 56, %v420_v54 }
  0xcc   : > { %v345_v48 = vsel %vm344_vm7, %v343_v47, %v328_v44 }
  0xcd   : > { %680 = vmatmul.msk.f32.vlgmr.msra.gmra.mxu0 %vm346_vm8, %v345_v48 }
 0x14a   : > { %v366_v7 = vpop.f32.mrf.mxu0 }
 0x14b   : > { %v369_v49 = vmax.f32 %v366_v7, 0.0 }
 0x14d   : > { %682 = vmatmul.msk.f32.vlgmr.msra.gmra.mxu1 %vm371_vm10, %v369_v49 }
 0x1ca   : > { %v396_v60 = vpop.f32.mrf.mxu1 }
 0x1cb   : > { %v683_v61 = vmul.f32 -1.442695, %v396_v60 }
 0x1cd   : > { %761 = vpow2.f32 %v683_v61 }
 0x1d3   : > { %v762_v58 = vpop.eup %761 }
 0x1d4   : > { %v402_v50 = vadd.f32 1.0, %v762_v58 }
 0x1d6   : > { %763 = vrcp.f32 %v402_v50  ;;  %v414_v15 = vand.u32 2147483648, %v402_v50  ;;  %v412_v59 = vand.u32 2147483647, %v402_v50  ;;  %vm408_vm12 = vweird.f32 %v402_v50 }
 0x1d8   : > { %v415_v26 = vor.u32 1.1754944e-38, %v414_v15  ;;  %vm413_vm14 = vcmp.eq.f32.partialorder %v412_v59, 8.507059e+37 }
 0x1dc   : > { %v764_v51 = vpop.eup %763 }
 0x1dd   : > { %v404_v52 = vmul.f32 %v764_v51, %v402_v50  ;;  %vm409_vm11 = vweird.f32 %v764_v51 }
 0x1de   : > { %vm410_vm13 = vmor %vm408_vm12, %vm409_vm11 }
 0x1df   : > { %v405_v57 = vsub.f32 1.0, %v404_v52 }
 0x1e1   : > { %v406_v63 = vmul.f32 %v764_v51, %v405_v57 }
 0x1e3   : > { %v407_v24 = vadd.f32 %v764_v51, %v406_v63 }
 0x1e5   : > { %v411_v62 = vsel %vm410_vm13, %v764_v51, %v407_v24 }
 0x1e6   : > { %v416_v33 = vsel %vm413_vm14, %v415_v26, %v411_v62 }
 0x1e7   : > { %v418_v34 = vperm.slane %v416_v33, 0  ;;  %v467_v35 = vperm.slane %v416_v33, 1 }
 0x1e9   : > { %435 = vperm.xlu0 %746, %v418_v34   ;;  %429 = vperm.xlu2 %745, %v418_v34  }
 0x1ea   : > { %423 = vperm.xlu1 %744, %v418_v34  }
 0x1f1   : > { %753 = vset.pattern.permute.xlu0 %v427_v56  ;;  %747 = vset.pattern.permute.xlu2 %v439_v3 }
 0x1f2   : > { %748 = vset.pattern.permute.xlu1 %v445_v16 }
 0x1f9   : > { %478 = vperm.xlu0 %753, %v467_v35   ;;  %441 = vperm.xlu2 %747, %v418_v34  }
 0x1fa   : > { %447 = vperm.xlu1 %748, %v418_v34  }
 0x201   : > { %758 = vset.pattern.permute.xlu0 %v457_v42  ;;  %749 = vset.pattern.permute.xlu2 %v451_v17 }
 0x202   : > { %750 = vset.pattern.permute.xlu1 %v457_v42 }
 0x209   : > { %508 = vperm.xlu0 %758, %v467_v35   ;;  %453 = vperm.xlu2 %749, %v418_v34  }
 0x20a   : > { %459 = vperm.xlu1 %750, %v418_v34  }
 0x211   : > { %751 = vset.pattern.permute.xlu2 %v463_v43  ;;  %760 = vset.pattern.permute.xlu0 %v463_v43 }
 0x212   : > { %752 = vset.pattern.permute.xlu1 %v420_v54 }
 0x219   : > { %465 = vperm.xlu2 %751, %v418_v34  }
 0x21a   : > { %472 = vperm.xlu1 %752, %v467_v35  }
 0x221   : > { %754 = vset.pattern.permute.xlu2 %v433_v55 }
 0x222   : > { %755 = vset.pattern.permute.xlu1 %v439_v3 }
 0x229   : > { %484 = vperm.xlu2 %754, %v467_v35  }
 0x22a   : > { %490 = vperm.xlu1 %755, %v467_v35  }
 0x231   : > { %756 = vset.pattern.permute.xlu2 %v445_v16 }
 0x232   : > { %757 = vset.pattern.permute.xlu1 %v451_v17 }
 0x239   : > { %496 = vperm.xlu2 %756, %v467_v35  }
 0x23a   : > { %502 = vperm.xlu1 %757, %v467_v35  }
 0x241   : > { %759 = vset.pattern.permute.xlu2 %v463_v43 }
 0x243   : > { %v430_v8 = vpop.permute.xlu2 %429 }
 0x244   : > { %v518_v44 = vmul.f32 %v430_v8, %v1016_v11  ;;  %v519_v47 = vmul.f32 %v430_v8, %v1019_v12 }
 0x246   : > { %550 = vst [vmem:[%s1150_s7 + $0x10] sm:$0xff] %v518_v44 }
 0x247   : > { %551 = vst [vmem:[%s1150_s7 + $0x18] sm:$0xff] %v519_v47 }
 0x249   : > { %514 = vperm.xlu2 %759, %v467_v35  }
 0x253   : > { %v442_v48 = vpop.permute.xlu2 %441 }
 0x254   : > { %v522_v25 = vmul.f32 %v442_v48, %v1040_v20  ;;  %v523_v11 = vmul.f32 %v442_v48, %v1043_v21 }
 0x256   : > { %554 = vst [vmem:[%s1150_s7 + $0x30] sm:$0xff] %v522_v25 }
 0x257   : > { %555 = vst [vmem:[%s1150_s7 + $0x38] sm:$0xff] %v523_v11 }
 0x25b   : > { %v436_v12 = vpop.permute.xlu0 %435 }
 0x25c   : > { %v520_v7 = vmul.f32 %v436_v12, %v1000_v5  ;;  %v521_v49 = vmul.f32 %v436_v12, %v1003_v6  ;;  %v424_v53 = vpop.permute.xlu1 %423 }
 0x25d   : > { %v516_v54 = vmul.f32 %v424_v53, %v992_v2  ;;  %v517_v55 = vmul.f32 %v424_v53, %v997_v4 }
 0x25e   : > { %552 = vst [vmem:[%s1150_s7 + $0x20] sm:$0xff] %v520_v7 }
 0x25f   : > { %553 = vst [vmem:[%s1150_s7 + $0x28] sm:$0xff] %v521_v49 }
 0x260   : > { %548 = vst [vmem:[%s1150_s7] sm:$0xff] %v516_v54 }
 0x261   : > { %549 = vst [vmem:[%s1150_s7 + $0x8] sm:$0xff] %v517_v55 }
 0x263   : > { %v454_v20 = vpop.permute.xlu2 %453 }
 0x264   : > { %v526_v21 = vmul.f32 %v454_v20, %v1058_v27  ;;  %v527_v5 = vmul.f32 %v454_v20, %v1061_v28 }
 0x266   : > { %558 = vst [vmem:[%s1150_s7 + $0x50] sm:$0xff] %v526_v21 }
 0x267   : > { %559 = vst [vmem:[%s1150_s7 + $0x58] sm:$0xff] %v527_v5 }
 0x26b   : > { %v479_v2 = vpop.permute.xlu0 %478 }
 0x26c   : > { %v534_v4 = vmul.f32 %v479_v2, %v1010_v9  ;;  %v535_v6 = vmul.f32 %v479_v2, %v1013_v10  ;;  %v448_v56 = vpop.permute.xlu1 %447 }
 0x26d   : > { %v524_v60 = vmul.f32 %v448_v56, %v1046_v22  ;;  %v525_v61 = vmul.f32 %v448_v56, %v1049_v23 }
 0x26e   : > { %566 = vst [vmem:[%s1150_s7 + $0x90] sm:$0xff] %v534_v4 }
 0x26f   : > { %567 = vst [vmem:[%s1150_s7 + $0x98] sm:$0xff] %v535_v6 }
 0x270   : > { %556 = vst [vmem:[%s1150_s7 + $0x40] sm:$0xff] %v524_v60 }
 0x271   : > { %557 = vst [vmem:[%s1150_s7 + $0x48] sm:$0xff] %v525_v61 }
 0x273   : > { %v466_v27 = vpop.permute.xlu2 %465 }
 0x274   : > { %v530_v28 = vmul.f32 %v466_v27, %v1094_v40  ;;  %v531_v9 = vmul.f32 %v466_v27, %v1097_v41 }
 0x276   : > { %562 = vst [vmem:[%s1150_s7 + $0x70] sm:$0xff] %v530_v28 }
 0x277   : > { %563 = vst [vmem:[%s1150_s7 + $0x78] sm:$0xff] %v531_v9 }
 0x27b   : > { %v509_v10 = vpop.permute.xlu0 %508 }
 0x27c   : > { %v544_v22 = vmul.f32 %v509_v10, %v1082_v36  ;;  %v545_v23 = vmul.f32 %v509_v10, %v1085_v37  ;;  %v460_v58 = vpop.permute.xlu1 %459 }
 0x27d   : > { %v528_v50 = vmul.f32 %v460_v58, %v1088_v38  ;;  %v529_v51 = vmul.f32 %v460_v58, %v1091_v39 }
 0x27e   : > { %576 = vst [vmem:[%s1150_s7 + $0xe0] sm:$0xff] %v544_v22 }
 0x27f   : > { %577 = vst [vmem:[%s1150_s7 + $0xe8] sm:$0xff] %v545_v23 }
 0x280   : > { %560 = vst [vmem:[%s1150_s7 + $0x60] sm:$0xff] %v528_v50 }
 0x281   : > { %561 = vst [vmem:[%s1150_s7 + $0x68] sm:$0xff] %v529_v51 }
 0x283   : > { %v485_v40 = vpop.permute.xlu2 %484 }
 0x284   : > { %v536_v41 = vmul.f32 %v485_v40, %v1022_v13  ;;  %v537_v36 = vmul.f32 %v485_v40, %v1025_v14 }
 0x286   : > { %568 = vst [vmem:[%s1150_s7 + $0xa0] sm:$0xff] %v536_v41 }
 0x287   : > { %569 = vst [vmem:[%s1150_s7 + $0xa8] sm:$0xff] %v537_v36 }
 0x28c   : > { %v473_v37 = vpop.permute.xlu1 %472 }
 0x28d   : > { %v532_v38 = vmul.f32 %v473_v37, %v986_v0  ;;  %v533_v39 = vmul.f32 %v473_v37, %v989_v1 }
 0x28f   : > { %564 = vst [vmem:[%s1150_s7 + $0x80] sm:$0xff] %v532_v38 }
 0x290   : > { %565 = vst [vmem:[%s1150_s7 + $0x88] sm:$0xff] %v533_v39 }
 0x293   : > { %v497_v52 = vpop.permute.xlu2 %496 }
 0x294   : > { %v540_v57 = vmul.f32 %v497_v52, %v1064_v29  ;;  %v541_v13 = vmul.f32 %v497_v52, %v1067_v30 }
 0x296   : > { %572 = vst [vmem:[%s1150_s7 + $0xc0] sm:$0xff] %v540_v57 }
 0x297   : > { %573 = vst [vmem:[%s1150_s7 + $0xc8] sm:$0xff] %v541_v13 }
 0x29c   : > { %v491_v14 = vpop.permute.xlu1 %490 }
 0x29d   : > { %v538_v15 = vmul.f32 %v491_v14, %v1034_v18  ;;  %v539_v0 = vmul.f32 %v491_v14, %v1037_v19 }
 0x29f   : > { %570 = vst [vmem:[%s1150_s7 + $0xb0] sm:$0xff] %v538_v15 }
 0x2a0   : > { %571 = vst [vmem:[%s1150_s7 + $0xb8] sm:$0xff] %v539_v0 }
 0x2a3   : > { %v515_v1 = vpop.permute.xlu2 %514 }
 0x2a4   : > { %v546_v63 = vmul.f32 %v515_v1, %v1106_v45  ;;  %v547_v29 = vmul.f32 %v515_v1, %v1109_v46 }
 0x2a6   : > { %578 = vst [vmem:[%s1150_s7 + $0xf0] sm:$0xff] %v546_v63 }
 0x2a7   : > { %579 = vst [vmem:[%s1150_s7 + $0xf8] sm:$0xff] %v547_v29 }
 0x2ac   : > { %v503_v18 = vpop.permute.xlu1 %502 }
 0x2ad   : > { %v542_v19 = vmul.f32 %v503_v18, %v1070_v31  ;;  %v543_v30 = vmul.f32 %v503_v18, %v1073_v32 }
 0x2af   : > { %574 = vst [vmem:[%s1150_s7 + $0xd0] sm:$0xff] %v542_v19 }
 0x2b0   : > { %575 = vst [vmem:[%s1150_s7 + $0xd8] sm:$0xff] %v543_v30 }
 0x2b1   : > { %822 = shalt.err (!%p819_p4)
}
 0x2b2   : > { %s865_s29 = smov 256   ;;  %s866_s6 = smov 16  }
 0x2b3   : > { %696 = dma.vmem_to_hbm [thread:$0]  (%p937_p11), %s595_s11, 4096, %s597_s17, %s581_s19, %s865_s29, %s865_s29, %s866_s6  }
 0x2b4 PF: > { %s611_s23 = sand.u32 1, %s849_s12   ;;  %p1259_p7 = scmp.ge.s32.totalorder %s861_s15, 2 }
 0x2b5   : > { %s612_s5 = scalar_lea.sflag [#allocation4], %s611_s23 }
 0x2b6   : > { %p703_p5 = pnand %p1259_p7, %p941_p12 }
 0x2b8   : > { %p704_p8 = pneg %p703_p5 }
 0x2ba   : > { %844 = dma.done.wait (%p704_p8), %s612_s5, 4096  }
 0x2bb   : > { %846 = vsyncadd (%p704_p8), %s612_s5, 4294963200  ;;  %p16_p10 = scmp.ge.s32.totalorder %s912_s18, 4   ;;  %s1260_s12 = smov %s853_s13 }
 0x2bc   : > { %s1261_s13 = smov %s857_s14  ;;  %s1262_s14 = smov %s924_s21 }
 0x2bd   : > { %s1263_s15 = smov %s912_s18  ;;  %18 = sbr.rel (!%p16_p10) target bundleno = 5 (0x5), region = 77 }
 0x2c2   :  { %618 = vsyncpa [#allocation3], 1 }
 0x2c3   :  { %620 = vsyncpa [#allocation3 + $0x1], 1 }
 0x2c4   :  { %621 = vsyncpa [#allocation4], 1 }
 0x2c5   :  { %623 = vsyncpa [#allocation4 + $0x1], 1 }

</bundles_post_ra>
